<compile_context>
chip_gen: v6e
topology: v6e:2x2x1
jax: 0.10.0
libtpu: 0.0.40
codegen_flags: <defaults>
</compile_context>

<pallas_src>
import functools
import math

import jax
import jax.numpy as jnp
from jax import lax
from jax.experimental import pallas as pl
from jax.experimental.pallas import tpu as pltpu


def _round_up(x, m):
    return (x + m - 1) // m * m


# ---------------------------------------------------------------------------
# Wrapper-side layout plumbing
# ---------------------------------------------------------------------------

# Window offsets (dh, dw) into the once-padded image such that copy[h, w] =
# x_pad[h + dh, w + dw].  Order matches torch.cat((x, *shifted_x), dim=1) with
# shifts ((1,-1,0,0), (-1,1,0,0), (0,0,1,-1), (0,0,-1,1)).
_SHIFT_OFFSETS = ((1, 1), (1, 0), (1, 2), (0, 1), (2, 1))


def _shifted_patch_tokens(x, patch_size):
    """Shift + concat + patchify with feature order (c5, p1, p2), c5 = shift*C + c.

    One zero-pad plus 5 window slices replaces the 4 separate F.pad calls, and the
    patchify transpose keeps the minor axis fixed (the original (p1, p2, c) order
    would move a 5C(=15)-wide axis to the lanes).  The weight rows are permuted
    once in prepare_spt_params to compensate, so the math is unchanged.
    """
    B, C, H, W = x.shape
    p = patch_size
    hn, wn = H // p, W // p
    xp = jnp.pad(x, ((0, 0), (0, 0), (1, 1), (1, 1)))
    x5 = jnp.stack([xp[:, :, dh:dh + H, dw:dw + W] for dh, dw in _SHIFT_OFFSETS],
                   axis=1)                                     # (B, 5, C, H, W)
    C5 = 5 * C
    x5 = x5.reshape(B, C5, hn, p, wn, p)                       # (b, c5, h, p1, w, p2)
    x5 = jnp.transpose(x5, (0, 2, 4, 1, 3, 5))                 # (b, h, w, c5, p1, p2)
    return x5.reshape(B, hn * wn, C5 * p * p)


def prepare_spt_params(params, *, patch_size, channels, eps=1e-5):
    """One-time parameter preparation (fold, permute, pad, cast) — cache the result."""
    p = patch_size
    C5 = 5 * channels
    D = p * p * C5                                             # true patch_dim
    dim = params["fc_bias"].shape[0]
    Kp = _round_up(D, 128)
    Np = _round_up(dim, 128)

    gamma = params["ln_weight"].astype(jnp.float32)
    beta = params["ln_bias"].astype(jnp.float32)
    wt = params["fc_weight"].T.astype(jnp.float32)             # (D, dim); torch is (out, in)

    # Fold LayerNorm affine into the Linear:
    #   LN(x) @ W.T + b == ((x-mean)*rstd) @ (gamma[:,None]*W.T) + (beta @ W.T + b)
    w_fold = gamma[:, None] * wt                               # (D, dim)
    b_fold = beta @ wt + params["fc_bias"].astype(jnp.float32)

    # Permute rows from the PyTorch feature order (p1, p2, c5) to the wrapper's
    # (c5, p1, p2) order.
    w_fold = w_fold.reshape(p, p, C5, dim).transpose(2, 0, 1, 3).reshape(D, dim)

    # Zero-pad to lane-dense sizes; bf16 weight for native MXU throughput.
    w_bf16 = jnp.pad(w_fold, ((0, Kp - D), (0, Np - dim))).astype(jnp.bfloat16)
    # Aux operand (2, Np) f32: row 0 = colsum(W') of the bf16 weight, row 1 = bias'.
    wsum = jnp.sum(w_bf16.astype(jnp.float32), axis=0)
    bias = jnp.pad(b_fold, (0, Np - dim))
    aux = jnp.stack([wsum, bias], axis=0)

    return {"w": w_bf16, "aux": aux, "patch_size": p, "channels": channels,
            "patch_dim": D, "dim": dim, "eps": eps}


# ---------------------------------------------------------------------------
# Pallas kernel: fused LayerNorm + Linear epilogue
# ---------------------------------------------------------------------------

def _spt_epilogue_kernel(tok_ref, w_ref, aux_ref, o_ref, *, inv_d, eps):
    """One token tile:  out = rstd * (x @ W' - mean * colsum(W')) + b'.

    LN statistics divide by the true patch_dim; zero-padded lanes contribute 0 to
    both sums and hit zero weight rows, so padding never changes the result.
    One-pass E[x^2]-mean^2 variance (f32) — fine for normalized image-scale inputs.
    """
    x = tok_ref[...].astype(jnp.float32)                       # (TM, Kp)
    mean = jnp.sum(x, axis=-1, keepdims=True) * inv_d
    var = jnp.maximum(
        jnp.sum(x * x, axis=-1, keepdims=True) * inv_d - mean * mean, 0.0)
    rstd = lax.rsqrt(var + eps)                                # (TM, 1)
    raw = jnp.dot(x.astype(w_ref.dtype), w_ref[...],
                  preferred_element_type=jnp.float32)          # MXU bf16 -> f32, (TM, Np)
    aux = aux_ref[...]                                         # (2, Np) f32
    wsum, bias = aux[0:1, :], aux[1:2, :]
    o_ref[...] = (rstd * (raw - mean * wsum) + bias).astype(o_ref.dtype)


def _pick_token_tile(M, Kp, Np, tok_bytes, out_bytes, budget_bytes):
    """Largest token tile that fits the VMEM budget (double-buffered token/output
    tiles, single-buffered bf16 weight, f32 intermediates), keeping >= 4 grid steps
    so v7x's two TensorCores stay balanced.  Budget is conservative for v5e/v7x."""
    if M <= 128:
        return _round_up(max(M, 8), 8)
    w_bytes = Kp * Np * 2                                      # bf16, single-buffered
    for tm in (512, 384, 256):
        need = (w_bytes + 2 * tm * Kp * tok_bytes + 2 * tm * Np * out_bytes
                + tm * (Kp + Np) * 4)                          # + f32 intermediates
        if need <= budget_bytes and pl.cdiv(M, tm) >= 4:
            return tm
    return 128


def spt_forward(x, prep):
    tokens = _shifted_patch_tokens(x, prep["patch_size"])      # (B, N, D), native dtype
    B, N, D = tokens.shape
    assert D == prep["patch_dim"]
    Kp, Np = prep["w"].shape
    dim = prep["dim"]
    out_dtype = tokens.dtype                                   # model dtype (f32 acc inside)

    M = B * N
    TM = _pick_token_tile(M, Kp, Np, tokens.dtype.itemsize,
                          jnp.dtype(out_dtype).itemsize, budget_bytes=24 << 20)
    Mp = _round_up(M, TM)

    tok = jnp.pad(tokens.reshape(M, D), ((0, Mp - M), (0, Kp - D)))

    kernel = functools.partial(_spt_epilogue_kernel, inv_d=1.0 / D, eps=prep["eps"])
    out = pl.pallas_call(
        kernel,
        out_shape=jax.ShapeDtypeStruct((Mp, Np), out_dtype),
        grid=(Mp // TM,),
        in_specs=[
            pl.BlockSpec((TM, Kp), lambda i: (i, 0)),          # token tile (pipelined)
            pl.BlockSpec((Kp, Np), lambda i: (0, 0),
                         pipeline_mode=pl.Buffered(1)),        # grid-invariant bf16 weight
            pl.BlockSpec((2, Np), lambda i: (0, 0),
                         pipeline_mode=pl.Buffered(1)),        # colsum(W') / bias'
        ],
        out_specs=pl.BlockSpec((TM, Np), lambda i: (i, 0)),    # lane-dense output tile
        compiler_params=pltpu.CompilerParams(
            dimension_semantics=("parallel",),                 # shards over v7x's 2 TCs
            vmem_limit_bytes=48 * 1024 * 1024),
    )(tok, prep["w"], prep["aux"])

    return out[:M, :dim].reshape(B, N, dim)


# ---------------------------------------------------------------------------
# Pure-JAX f32 reference (original PyTorch layout / math)
# ---------------------------------------------------------------------------

def _torch_pad_hw(x, pads):
    """torch.nn.functional.pad(x, (left, right, top, bottom)); negatives crop."""
    left, right, top, bottom = pads
    xp = jnp.pad(x, ((0, 0), (0, 0),
                     (max(top, 0), max(bottom, 0)),
                     (max(left, 0), max(right, 0))))
    h0 = -top if top < 0 else 0
    h1 = xp.shape[2] - (-bottom if bottom < 0 else 0)
    w0 = -left if left < 0 else 0
    w1 = xp.shape[3] - (-right if right < 0 else 0)
    return xp[:, :, h0:h1, w0:w1]


def spt_reference(x, params, patch_size, eps=1e-5):
    shifts = ((1, -1, 0, 0), (-1, 1, 0, 0), (0, 0, 1, -1), (0, 0, -1, 1))
    x5 = jnp.concatenate([x] + [_torch_pad_hw(x, s) for s in shifts], axis=1)
    B, C5, H, W = x5.shape
    p = patch_size
    hn, wn = H // p, W // p
    t = x5.reshape(B, C5, hn, p, wn, p)
    t = jnp.transpose(t, (0, 2, 4, 3, 5, 1)).reshape(B, hn * wn, p * p * C5)
    t = t.astype(jnp.float32)
    mean = jnp.mean(t, axis=-1, keepdims=True)
    var = jnp.mean((t - mean) ** 2, axis=-1, keepdims=True)
    h = (t - mean) / jnp.sqrt(var + eps) * params["ln_weight"] + params["ln_bias"]
    return h @ params["fc_weight"].T + params["fc_bias"]


if __name__ == "__main__":
    key = jax.random.PRNGKey(0)
    k1, k2, k3, k4, k5 = jax.random.split(key, 5)

    # Small shapes consistent with the module: NCHW input, patch_size dividing H, W.
    B, C, H, W = 2, 3, 16, 16
    patch_size = 4
    dim = 32
    patch_dim = patch_size * patch_size * 5 * C                # 240

    x = jax.random.normal(k1, (B, C, H, W), jnp.float32)

    bound = 1.0 / math.sqrt(patch_dim)
    params = {
        "ln_weight": 1.0 + 0.05 * jax.random.normal(k2, (patch_dim,), jnp.float32),
        "ln_bias": 0.05 * jax.random.normal(k3, (patch_dim,), jnp.float32),
        "fc_weight": jax.random.uniform(k4, (dim, patch_dim), jnp.float32, -bound, bound),
        "fc_bias": jax.random.uniform(k5, (dim,), jnp.float32, -bound, bound),
    }

    prep = prepare_spt_params(params, patch_size=patch_size, channels=C)  # one-time
    fwd = jax.jit(functools.partial(spt_forward, prep=prep))

    out = jax.block_until_ready(fwd(x))
    ref = spt_reference(x, params, patch_size)

    n_tok = (H // patch_size) * (W // patch_size)
    assert out.shape == (B, n_tok, dim), out.shape
    # bf16 MXU operands -> looser tolerance than a pure-f32 reference
    # (structural errors would be O(1), so this still catches real bugs).
    assert jnp.allclose(out, ref, atol=4e-2, rtol=4e-2), (
        float(jnp.max(jnp.abs(out - ref))))
    print("KERNEL_OK")
</pallas_src>

<mosaic_0001>
module attributes {stable_mosaic.version = 11 : i64} {
  func.func @_spt_epilogue_kernel(%arg0: i32, %arg1: memref<32x256xf32, #tpu.memory_space<vmem>>, %arg2: memref<256x128xbf16, #tpu.memory_space<vmem>>, %arg3: memref<2x128xf32, #tpu.memory_space<vmem>>, %arg4: memref<32x128xf32, #tpu.memory_space<vmem>>) attributes {dimension_semantics = [#tpu.dimension_semantics<parallel>], iteration_bounds = array<i64: 1>, scalar_prefetch = 0 : i64, scratch_operands = 0 : i64, tpu.core_type = #tpu.core_type<tc>, window_params = [{transform_indices = @transform_0, window_bounds = array<i64: 32, 256>}, {pipeline_mode = #tpu.pipeline_mode<synchronous>, transform_indices = @transform_1, window_bounds = array<i64: 256, 128>}, {pipeline_mode = #tpu.pipeline_mode<synchronous>, transform_indices = @transform_2, window_bounds = array<i64: 2, 128>}, {transform_indices = @transform_3, window_bounds = array<i64: 32, 128>}]} {
    %c0 = arith.constant 0 : index
    %c0_0 = arith.constant 0 : index
    %0 = vector.load %arg1[%c0, %c0_0] : memref<32x256xf32, #tpu.memory_space<vmem>>, vector<32x256xf32>
    %cst = arith.constant dense<0.000000e+00> : vector<32xf32>
    %1 = vector.multi_reduction <add>, %0, %cst [1] : vector<32x256xf32> to vector<32xf32>
    %2 = vector.shape_cast %1 : vector<32xf32> to vector<32x1xf32>
    %cst_1 = arith.constant 0.00416666688 : f32
    %3 = vector.broadcast %cst_1 : f32 to vector<32x1xf32>
    %4 = arith.mulf %2, %3 : vector<32x1xf32>
    %5 = arith.mulf %0, %0 : vector<32x256xf32>
    %cst_2 = arith.constant dense<0.000000e+00> : vector<32xf32>
    %6 = vector.multi_reduction <add>, %5, %cst_2 [1] : vector<32x256xf32> to vector<32xf32>
    %7 = vector.shape_cast %6 : vector<32xf32> to vector<32x1xf32>
    %cst_3 = arith.constant 0.00416666688 : f32
    %8 = vector.broadcast %cst_3 : f32 to vector<32x1xf32>
    %9 = arith.mulf %7, %8 : vector<32x1xf32>
    %10 = arith.mulf %4, %4 : vector<32x1xf32>
    %11 = arith.subf %9, %10 : vector<32x1xf32>
    %cst_4 = arith.constant 0.000000e+00 : f32
    %12 = vector.broadcast %cst_4 : f32 to vector<32x1xf32>
    %13 = arith.maximumf %11, %12 : vector<32x1xf32>
    %cst_5 = arith.constant 9.99999974E-6 : f32
    %14 = vector.broadcast %cst_5 : f32 to vector<32x1xf32>
    %15 = arith.addf %13, %14 : vector<32x1xf32>
    %16 = math.rsqrt %15 : vector<32x1xf32>
    %17 = arith.truncf %0 : vector<32x256xf32> to vector<32x256xbf16>
    %c0_6 = arith.constant 0 : index
    %c0_7 = arith.constant 0 : index
    %18 = vector.load %arg2[%c0_6, %c0_7] : memref<256x128xbf16, #tpu.memory_space<vmem>>, vector<256x128xbf16>
    %cst_8 = arith.constant dense<0.000000e+00> : vector<32x128xf32>
    %19 = tpu.matmul %17, %18, %cst_8 {dimension_numbers = #tpu.dot_dimension_numbers<[1], [0], [0], [1], [0, 0, 1, 1], [], []>} : vector<32x256xbf16>, vector<256x128xbf16>, vector<32x128xf32> -> vector<32x128xf32>
    %c0_9 = arith.constant 0 : index
    %c0_10 = arith.constant 0 : index
    %20 = vector.load %arg3[%c0_9, %c0_10] : memref<2x128xf32, #tpu.memory_space<vmem>>, vector<2x128xf32>
    %21 = vector.extract_strided_slice %20 {offsets = [0, 0], sizes = [1, 128], strides = [1, 1]} : vector<2x128xf32> to vector<1x128xf32>
    %22 = vector.extract_strided_slice %20 {offsets = [1, 0], sizes = [1, 128], strides = [1, 1]} : vector<2x128xf32> to vector<1x128xf32>
    %23 = vector.broadcast %4 : vector<32x1xf32> to vector<32x128xf32>
    %24 = vector.broadcast %21 : vector<1x128xf32> to vector<32x128xf32>
    %25 = arith.mulf %23, %24 : vector<32x128xf32>
    %26 = arith.subf %19, %25 : vector<32x128xf32>
    %27 = vector.broadcast %16 : vector<32x1xf32> to vector<32x128xf32>
    %28 = arith.mulf %27, %26 : vector<32x128xf32>
    %29 = vector.broadcast %22 : vector<1x128xf32> to vector<32x128xf32>
    %30 = arith.addf %28, %29 : vector<32x128xf32>
    %c0_11 = arith.constant 0 : index
    %c0_12 = arith.constant 0 : index
    %31 = vector.load %arg4[%c0_11, %c0_12] : memref<32x128xf32, #tpu.memory_space<vmem>>, vector<32x128xf32>
    tpu.vector_store %arg4[%c0_11, %c0_12], %30 {strides = array<i32>} : memref<32x128xf32, #tpu.memory_space<vmem>>, vector<32x128xf32>,
    return
  }
  func.func @transform_0(%arg0: i32) -> (i32, i32) {
    %c0_i32 = arith.constant 0 : i32
    %c0_i32_0 = arith.constant 0 : i32
    return %arg0, %c0_i32 : i32, i32
  }
  func.func @transform_1(%arg0: i32) -> (i32, i32) {
    %c0_i32 = arith.constant 0 : i32
    %c0_i32_0 = arith.constant 0 : i32
    %c0_i32_1 = arith.constant 0 : i32
    return %c0_i32, %c0_i32_0 : i32, i32
  }
  func.func @transform_2(%arg0: i32) -> (i32, i32) {
    %c0_i32 = arith.constant 0 : i32
    %c0_i32_0 = arith.constant 0 : i32
    %c0_i32_1 = arith.constant 0 : i32
    return %c0_i32, %c0_i32_0 : i32, i32
  }
  func.func @transform_3(%arg0: i32) -> (i32, i32) {
    %c0_i32 = arith.constant 0 : i32
    %c0_i32_0 = arith.constant 0 : i32
    return %arg0, %c0_i32 : i32, i32
  }
}

</mosaic_0001>

<bundles_post_ra>
// kernel: spt_forward.1
= control target key start
LH: loop header
LB: loop body
LE: loop exit
PB: predicated region body
PF: predicated region fallthrough
CT: control target
= control target key end

     0   :  { %s520_s0 = inlined_call_operand.vmem [shape: f32[32,256], index: 0, kind: input, shape index: {}]   ;;  %s521_s1 = inlined_call_operand.vmem [shape: bf16[256,128], index: 1, kind: input, shape index: {}]   ;;  %s522_s2 = inlined_call_operand.vmem [shape: f32[2,128], index: 2, kind: input, shape index: {}]   ;;  %s523_s3 = inlined_call_operand.hbm [shape: f32[32,128], index: 3, kind: output, shape index: {}]  }
   0x1   :  { %v373_v0 = vld [vmem:[%s521_s1 + $0x78] sm:$0xff]   ;;  %v375_v2 = vld [vmem:[%s521_s1 + $0x70] sm:$0xff]   ;;  %v377_v4 = vld [vmem:[%s521_s1 + $0x68] sm:$0xff]  }
   0x2   :  { %v374_v1 = vld [vmem:[%s521_s1 + $0x38] sm:$0xff]   ;;  %326 = vmatprep.subr.bf16.mxu0 %v373_v0  ;;  %354 = vmatprep.subr.bf16.mxu1 %v373_v0  ;;  %v376_v3 = vld [vmem:[%s521_s1 + $0x30] sm:$0xff]   ;;  %v378_v5 = vld [vmem:[%s521_s1 + $0x28] sm:$0xff]  }
   0x3   :  { %327 = vmatpush3.bf16.msra.mxu0 %v374_v1  ;;  %362 = vmatpush3.bf16.msra.mxu1 %v374_v1  ;;  %v379_v6 = vld [vmem:[%s521_s1 + $0x60] sm:$0xff]   ;;  %v381_v8 = vld [vmem:[%s521_s1 + $0x58] sm:$0xff]   ;;  %v383_v10 = vld [vmem:[%s521_s1 + $0x50] sm:$0xff]  }
   0x4   :  { %328 = vmatprep.subr.bf16.mxu0 %v375_v2  ;;  %355 = vmatprep.subr.bf16.mxu1 %v375_v2  ;;  %v380_v7 = vld [vmem:[%s521_s1 + $0x20] sm:$0xff]   ;;  %v382_v9 = vld [vmem:[%s521_s1 + $0x18] sm:$0xff]   ;;  %v17_v11 = vld [vmem:[%s520_s0 + $0x8] sm:$0xff] }
   0x5   :  { %v19_v12 = vld [vmem:[%s520_s0 + $0x18] sm:$0xff]  ;;  %v21_v13 = vld [vmem:[%s520_s0 + $0x28] sm:$0xff]  ;;  %v16_v16 = vld [vmem:[%s520_s0] sm:$0xff] }
   0x6   :  { %v85_v14 = vpack.c.bf16 %v19_v12, %v17_v11  ;;  %v23_v15 = vld [vmem:[%s520_s0 + $0x38] sm:$0xff]  ;;  %v20_v18 = vld [vmem:[%s520_s0 + $0x20] sm:$0xff]  ;;  %v24_v19 = vadd.f32 %v17_v11, %v16_v16  ;;  %v384_v20 = vld [vmem:[%s521_s1 + $0x10] sm:$0xff]  }
   0x7   :  { %329 = vmatpush3.bf16.msra.mxu0 %v376_v3  ;;  %363 = vmatpush3.bf16.msra.mxu1 %v376_v3  ;;  %v87_v17 = vpack.c.bf16 %v23_v15, %v21_v13  ;;  %v30_v21 = vadd.f32 %v21_v13, %v20_v18 }
   0x8   :  { %330 = vmatprep.subr.bf16.mxu0 %v377_v4  ;;  %356 = vmatprep.subr.bf16.mxu1 %v377_v4 }
   0xb   :  { %331 = vmatpush3.bf16.msra.mxu0 %v378_v5  ;;  %364 = vmatpush3.bf16.msra.mxu1 %v378_v5 }
   0xc   :  { %332 = vmatprep.subr.bf16.mxu0 %v379_v6  ;;  %357 = vmatprep.subr.bf16.mxu1 %v379_v6 }
   0xf   :  { %333 = vmatpush3.bf16.msra.mxu0 %v380_v7  ;;  %365 = vmatpush3.bf16.msra.mxu1 %v380_v7 }
  0x10   :  { %334 = vmatprep.subr.bf16.mxu0 %v381_v8  ;;  %358 = vmatprep.subr.bf16.mxu1 %v381_v8 }
  0x13   :  { %335 = vmatpush3.bf16.msra.mxu0 %v382_v9  ;;  %366 = vmatpush3.bf16.msra.mxu1 %v382_v9 }
  0x14   :  { %8 = vsyncpa [#allocation3], 0  ;;  %336 = vmatprep.subr.bf16.mxu0 %v383_v10  ;;  %359 = vmatprep.subr.bf16.mxu1 %v383_v10  ;;  %v385_v22 = vld [vmem:[%s521_s1 + $0x48] sm:$0xff]   ;;  %v18_v23 = vld [vmem:[%s520_s0 + $0x10] sm:$0xff]  ;;  %v41_v26 = vmul.f32 %v17_v11, %v17_v11  ;;  %v43_v27 = vmul.f32 %v19_v12, %v19_v12  ;;  %v40_v29 = vmul.f32 %v16_v16, %v16_v16  ;;  %v266_v6 = vlaneseq }
  0x15   :  { %248 = vmatprep.mubr.bf16.mxu0 %v85_v14  ;;  %256 = vmatprep.mubr.bf16.mxu1 %v87_v17  ;;  %v22_v24 = vld [vmem:[%s520_s0 + $0x30] sm:$0xff]  ;;  %v27_v25 = vadd.f32 %v19_v12, %v18_v23  ;;  %v42_v30 = vmul.f32 %v18_v23, %v18_v23  ;;  %v386_v31 = vld [vmem:[%s521_s1 + $0x8] sm:$0xff]   ;;  %v387_v32 = vld [vmem:[%s521_s1 + $0x40] sm:$0xff]   ;;  %v45_v35 = vmul.f32 %v21_v13, %v21_v13 }
  0x16   :  { %25 = vadd.xlane.f32.xlu0 %v24_v19  ;;  %31 = vadd.xlane.f32.xlu1 %v30_v21  ;;  %v33_v28 = vadd.f32 %v23_v15, %v22_v24  ;;  %v48_v33 = vadd.f32 %v41_v26, %v40_v29  ;;  %v388_v36 = vld [vmem:[%s521_s1] sm:$0xff]   ;;  %v44_v37 = vmul.f32 %v20_v18, %v20_v18  ;;  %v267_v11 = vshrl.u32 %v266_v6, 7 }
  0x17   :  { %337 = vmatpush3.bf16.msra.mxu0 %v384_v20  ;;  %367 = vmatpush3.bf16.msra.mxu1 %v384_v20  ;;  %v51_v34 = vadd.f32 %v43_v27, %v42_v30  ;;  %v46_v38 = vmul.f32 %v22_v24, %v22_v24  ;;  %v47_v39 = vmul.f32 %v23_v15, %v23_v15  ;;  %v265_v15 = vld [vmem:[%s522_s2] sm:$0x3]  ;;  %s419_s2 = smov [#allocation2]  }
  0x18   :  { %338 = vmatprep.subr.bf16.mxu0 %v385_v22  ;;  %360 = vmatprep.subr.bf16.mxu1 %v385_v22  ;;  %v84_v40 = vpack.c.bf16 %v18_v23, %v16_v16  ;;  %v86_v41 = vpack.c.bf16 %v22_v24, %v20_v18  ;;  %v54_v42 = vadd.f32 %v45_v35, %v44_v37  ;;  %v268_v14 = vsub.s32 0, %v267_v11  ;;  %s299_s6 = sshll.u32 %s419_s2, 4  ;;  %s300_s6 = int_to_ptr.vmem [resolvable:$true] %s299_s6 }
  0x19   :  { %v57_v43 = vadd.f32 %v47_v39, %v46_v38  ;;  %v284_v19 = vsub.s32 1, %v267_v11  ;;  %s397_s7 = scalar_lea.vmem %s300_s6, 512  ;;  %p402_p1 = scmp.lt.s32.totalorder %s300_s6, %s300_s6 }
  0x1a   :  { %28 = vadd.xlane.f32.xlu0 %v27_v25  ;;  %34 = vadd.xlane.f32.xlu1 %v33_v28  ;;  %v269_v16 = vrot.slane %v265_v15, %v268_v14  ;;  %p398_p0 = scmp.ne.s32.totalorder %s300_s6, %s397_s7  ;;  %p403_p2 = scmp.lt.s32.totalorder %s397_s7, %s397_s7 }
  0x1b   :  { %339 = vmatpush3.bf16.msra.mxu0 %v386_v31  ;;  %368 = vmatpush3.bf16.msra.mxu1 %v386_v31  ;;  %v285_v29 = vrot.slane %v265_v15, %v284_v19 }
  0x1c   :  { %340 = vmatprep.subr.bf16.mxu0 %v387_v32  ;;  %361 = vmatprep.subr.bf16.mxu1 %v387_v32  ;;  %p404_p3 = por %p403_p2, %p402_p1 }
  0x1e   :  { %49 = vadd.xlane.f32.xlu0 %v48_v33  ;;  %52 = vadd.xlane.f32.xlu1 %v51_v34  ;;  %p405_p4 = pnand %p404_p3, %p398_p0 }
  0x1f   :  { %341 = vmatpush3.bf16.msra.mxu0 %v388_v36  ;;  %369 = vmatpush3.bf16.msra.mxu1 %v388_v36 }
  0x22   :  { %249 = vmatmul.mubr.bf16.vlgmr.msra.gmra.mxu0 %v84_v40  ;;  %257 = vmatmul.mubr.bf16.vlgmr.msra.gmra.mxu1 %v86_v41 }
  0x23   :  { %55 = vadd.xlane.f32.xlu0 %v54_v42  ;;  %58 = vadd.xlane.f32.xlu1 %v57_v43 }
  0x9f   :  { %v26_v44 = vpop.xlane.xlu0 %25  ;;  %v32_v45 = vpop.xlane.xlu1 %31 }
  0xa0   :  { %v36_v49 = vmul.f32 0.004166667, %v26_v44  ;;  %v38_v51 = vmul.f32 0.004166667, %v32_v45 }
  0xa2   :  { %v64_v53 = vmul.f32 %v36_v49, %v36_v49  ;;  %v66_v56 = vmul.f32 %v38_v51, %v38_v51  ;;  %v270_v22 = vmul.f32 %v269_v16, %v36_v49  ;;  %v272_v23 = vmul.f32 %v269_v16, %v38_v51 }
  0xa3   :  { %v29_v46 = vpop.xlane.xlu0 %28  ;;  %v35_v47 = vpop.xlane.xlu1 %34 }
  0xa4   :  { %v37_v54 = vmul.f32 0.004166667, %v29_v46  ;;  %v39_v57 = vmul.f32 0.004166667, %v35_v47 }
  0xa6   :  { %v65_v60 = vmul.f32 %v37_v54, %v37_v54  ;;  %v67_v63 = vmul.f32 %v39_v57, %v39_v57  ;;  %v271_v33 = vmul.f32 %v269_v16, %v37_v54  ;;  %v273_v34 = vmul.f32 %v269_v16, %v39_v57 }
  0xa7   :  { %v50_v48 = vpop.xlane.xlu0 %49  ;;  %v53_v50 = vpop.xlane.xlu1 %52 }
  0xa8   :  { %v60_v55 = vmul.f32 0.004166667, %v50_v48  ;;  %v61_v62 = vmul.f32 0.004166667, %v53_v50 }
  0xaa   :  { %v68_v61 = vsub.f32 %v60_v55, %v64_v53  ;;  %v69_v3 = vsub.f32 %v61_v62, %v65_v60 }
  0xac   :  { %v56_v52 = vpop.xlane.xlu0 %55  ;;  %v59_v59 = vpop.xlane.xlu1 %58  ;;  %v72_v2 = vmax.f32 %v68_v61, 0.0  ;;  %v73_v8 = vmax.f32 %v69_v3, 0.0 }
  0xad   :  { %v62_v58 = vmul.f32 0.004166667, %v56_v52  ;;  %v63_v1 = vmul.f32 0.004166667, %v59_v59 }
  0xae   :  { %v76_v7 = vadd.f32 1e-05, %v72_v2  ;;  %v77_v12 = vadd.f32 1e-05, %v73_v8 }
  0xaf   :  { %v70_v0 = vsub.f32 %v62_v58, %v66_v56  ;;  %v71_v5 = vsub.f32 %v63_v1, %v67_v63 }
  0xb0   :  { %389 = vrsqrt.f32 %v76_v7 }
  0xb1   :  { %v74_v4 = vmax.f32 %v70_v0, 0.0  ;;  %v75_v10 = vmax.f32 %v71_v5, 0.0 }
  0xb3   :  { %v78_v9 = vadd.f32 1e-05, %v74_v4  ;;  %v79_v13 = vadd.f32 1e-05, %v75_v10 }
  0xb5   :  { %391 = vrsqrt.f32 %v78_v9 }
  0xb6   :  { %393 = vrsqrt.f32 %v77_v12 }
  0xb7   :  { %395 = vrsqrt.f32 %v79_v13 }
  0xbd   :  { %v390_v28 = vpop.eup %389 }
  0xc2   :  { %v392_v32 = vpop.eup %391 }
  0xc3   :  { %v394_v41 = vpop.eup %393 }
  0xc4   :  { %v396_v46 = vpop.eup %395 }
  0xe2   :  { %v342_v17 = vpop.f32.mrf.mxu0  ;;  %v348_v18 = vpop.f32.mrf.mxu1 }
  0xe4   :  { %v343_v20 = vpop.f32.mrf.mxu0  ;;  %v349_v21 = vpop.f32.mrf.mxu1 }
  0xe5   :  { %v344_v24 = vadd.f32 %v343_v20, %v342_v17  ;;  %v350_v25 = vadd.f32 %v349_v21, %v348_v18 }
  0xe6   :  { %v345_v26 = vpop.f32.mrf.mxu0  ;;  %v351_v27 = vpop.f32.mrf.mxu1 }
  0xe7   :  { %v274_v30 = vsub.f32 %v344_v24, %v270_v22  ;;  %v276_v31 = vsub.f32 %v350_v25, %v272_v23 }
  0xe8   :  { %v346_v35 = vpop.f32.mrf.mxu0  ;;  %v352_v36 = vpop.f32.mrf.mxu1 }
  0xe9   :  { %v278_v37 = vmul.f32 %v390_v28, %v274_v30  ;;  %v280_v38 = vmul.f32 %v392_v32, %v276_v31  ;;  %v347_v39 = vadd.f32 %v346_v35, %v345_v26  ;;  %v353_v40 = vadd.f32 %v352_v36, %v351_v27 }
  0xeb   :  { %v286_v42 = vadd.f32 %v285_v29, %v278_v37  ;;  %v288_v43 = vadd.f32 %v285_v29, %v280_v38  ;;  %v275_v44 = vsub.f32 %v347_v39, %v271_v33  ;;  %v277_v45 = vsub.f32 %v353_v40, %v273_v34 }
  0xed   :  { %290 = vst [vmem:[#allocation2] sm:$0xff] %v286_v42  ;;  %292 = vst [vmem:[#allocation2 + $0x10] sm:$0xff] %v288_v43  ;;  %v279_v47 = vmul.f32 %v394_v41, %v275_v44  ;;  %v281_v48 = vmul.f32 %v396_v46, %v277_v45 }
  0xef   :  { %v287_v49 = vadd.f32 %v285_v29, %v279_v47  ;;  %v289_v50 = vadd.f32 %v285_v29, %v281_v48 }
  0xf1   :  { %291 = vst [vmem:[#allocation2 + $0x8] sm:$0xff] %v287_v49  ;;  %293 = vst [vmem:[#allocation2 + $0x18] sm:$0xff] %v289_v50 }
  0xf2   :  { %408 = shalt.err (!%p405_p4)
}
  0xf3   :  { %s420_s8 = smov 128   ;;  %s421_s9 = smov 8  }
  0xf4   :  { %305 = dma.vmem_to_hbm [thread:$0]  %s300_s6, 512, %s523_s3, [#allocation3], %s420_s8, %s420_s8, %s421_s9  }
  0xf5   :  { %417 = dma.done.wait [#allocation3], 512  }
  0xf6   :  { %418 = vsyncadd [#allocation3], 4294966784 }
  0xf7   :  { %309 = vsyncpa [#allocation3], 1 }

</bundles_post_ra>
